<compile_context>
chip_gen: v7x
topology: tpu7x:2x2x1
jax: 0.10.0
libtpu: 0.0.40
codegen_flags: <defaults>
</compile_context>

<pallas_src>
import functools
import math

import numpy as np
import jax
import jax.numpy as jnp
from jax import lax
from jax.experimental import pallas as pl
from jax.experimental.pallas import tpu as pltpu


# ---------------------------------------------------------------------------
# Lane-shift helpers (static slice + zero column; no mosaic roll needed)
# ---------------------------------------------------------------------------
def _shift_right(v):
    """result[:, l] = v[:, l-1]; lane 0 of the block gets zero."""
    zero = jnp.zeros((v.shape[0], 1), v.dtype)
    return jnp.concatenate([zero, v[:, :-1]], axis=1)


def _shift_left(v):
    """result[:, l] = v[:, l+1]; last lane of the block gets zero."""
    zero = jnp.zeros((v.shape[0], 1), v.dtype)
    return jnp.concatenate([v[:, 1:], zero], axis=1)


# ---------------------------------------------------------------------------
# Pallas kernel: one lane block = `samples_per_block` packed samples
# ---------------------------------------------------------------------------
def residual_se_kernel(x_ref, w1_ref, w2_ref, wsc_ref, bias_ref,
                       wf1_ref, bf1_ref, wf2_ref,
                       pavg_ref, sbc_ref, sel_ref, out_ref,
                       *, seg_len, identity_shortcut):
    x = x_ref[...]                                   # (Cin, BL) bf16
    BL = x.shape[-1]

    # Segment-edge masks from an iota (cheap, no extra HBM input): zero the
    # neighbour taps that would leak across per-sample segment boundaries.
    lane = lax.broadcasted_iota(jnp.int32, (1, BL), 1)
    pos = lane % seg_len
    not_first = pos != 0
    not_last = pos != (seg_len - 1)

    bias = bias_ref[...]                             # (Cout, 4) f32
    c1, c2, csc, bf2 = bias[:, 0:1], bias[:, 1:2], bias[:, 2:3], bias[:, 3:4]

    def conv3(v, w_ref):
        # k=3 'same' conv: shifted taps stacked on sublanes, one fused MXU dot.
        v_prev = jnp.where(not_first, _shift_right(v), 0)
        v_next = jnp.where(not_last, _shift_left(v), 0)
        taps = jnp.concatenate([v_prev, v, v_next], axis=0)      # (3*C, BL) bf16
        return jnp.dot(w_ref[...], taps, preferred_element_type=jnp.float32)

    # shortcut (1x1 conv with folded BN scale; csc is the remaining additive term)
    if identity_shortcut:
        res = x.astype(jnp.float32)
    else:
        res = jnp.dot(wsc_ref[...], x, preferred_element_type=jnp.float32) + csc

    # conv1 -> (folded) BN -> ReLU ; conv2 -> (folded) BN -> ReLU
    h = jnp.maximum(conv3(x, w1_ref) + c1, 0.0)
    h = jnp.maximum(conv3(h.astype(jnp.bfloat16), w2_ref) + c2, 0.0)

    # SE: per-sample mean -> FC -> ReLU -> FC -> sigmoid -> per-sample gate (f32, exact)
    y = jnp.dot(h, pavg_ref[...], preferred_element_type=jnp.float32)        # (Cout, B)
    z = jnp.maximum(jnp.dot(wf1_ref[...], y, preferred_element_type=jnp.float32)
                    + bf1_ref[...], 0.0)                                      # (hid, B)
    s = jax.nn.sigmoid(jnp.dot(wf2_ref[...], z, preferred_element_type=jnp.float32)
                       + bf2)                                                 # (Cout, B)
    gate = jnp.dot(s, sbc_ref[...], preferred_element_type=jnp.float32)       # (Cout, BL)

    # gate, residual add, ReLU
    h = jnp.maximum(h * gate + res, 0.0)

    # MaxPool1d(2): pairwise max with the right neighbour, then compact the even lanes
    # in-kernel with an exact f32 selection matmul -> lane-dense pooled output block.
    # (Dropout = identity in inference.)
    m = jnp.maximum(h, _shift_left(h))
    out_ref[...] = jnp.dot(m, sel_ref[...], preferred_element_type=jnp.float32)


# ---------------------------------------------------------------------------
# Wrapper: parameter folding, batch packing, host-side constants, pallas_call
# ---------------------------------------------------------------------------
def residual_se_block(x, p, pool=2, eps=1e-5, max_block_lanes=1024):
    N, Cin, L = x.shape
    Cout, _, k = p["w1"].shape
    assert k == 3, "kernel implements k=3 convolutions"
    assert pool == 2 and L % pool == 0, "kernel implements MaxPool1d(2)"
    hidden = p["wf1"].shape[0]
    Lp = L // pool
    identity = "wsc" not in p

    # ---- lane-block sizing ---------------------------------------------------
    # Block width is a multiple of `unit` = lcm(L, 256) so that (a) sample segments
    # never straddle a block and (b) the pooled output block stays a multiple of
    # 128 lanes (unmasked lane-dense stores).  Capped by max_block_lanes so the
    # per-block SE / pooling constants stay VMEM-lean (important on v7x's 64 MiB).
    unit = L * 256 // math.gcd(L, 256)
    total = N * L
    n_units = max(1, pl.cdiv(total, unit))
    units_per_block = max(1, min(n_units, max_block_lanes // unit))
    block_lanes = units_per_block * unit
    n_blocks = pl.cdiv(n_units, units_per_block)
    samples_per_block = block_lanes // L
    Np = n_blocks * samples_per_block                 # padded batch

    pad = Np - N
    x_pad = jnp.pad(x, ((0, pad), (0, 0), (0, 0))) if pad else x
    x_packed = (jnp.transpose(x_pad, (1, 0, 2))
                .reshape(Cin, Np * L).astype(jnp.bfloat16))

    # ---- fold BatchNorm (running stats) into the conv weights ----------------
    def fold(conv_bias, bn):
        gamma, beta, mean, var = bn
        a = gamma / jnp.sqrt(var + eps)
        return a, a * (conv_bias - mean) + beta

    a1, c1 = fold(p["b1"], p["bn1"])
    a2, c2 = fold(p["b2"], p["bn2"])

    def fuse_conv(w, a):
        # (Cout, C, 3) -> (Cout, 3*C), BN scale folded in, tap order = [prev, mid, next]
        w = a[:, None, None] * w
        return jnp.concatenate([w[:, :, 0], w[:, :, 1], w[:, :, 2]], axis=1)

    w1f = fuse_conv(p["w1"], a1).astype(jnp.bfloat16)            # (Cout, 3*Cin)
    w2f = fuse_conv(p["w2"], a2).astype(jnp.bfloat16)            # (Cout, 3*Cout)

    if identity:                                                 # in_ch == out_ch
        wscf = jnp.zeros((Cout, Cin), jnp.bfloat16)              # unused in kernel
        csc = jnp.zeros((Cout,), jnp.float32)
    else:
        asc, csc = fold(p["bsc"], p["bnsc"])
        wscf = (asc[:, None] * p["wsc"][:, :, 0]).astype(jnp.bfloat16)

    bias = jnp.stack([c1, c2, csc, p["bf2"]], axis=1)            # (Cout, 4) f32
    bf1 = p["bf1"].reshape(hidden, 1)

    # ---- host-precomputed per-block constants (identical for every block) ----
    seg = jnp.arange(block_lanes, dtype=jnp.int32) // L
    onehot = (seg[:, None] ==
              jnp.arange(samples_per_block, dtype=jnp.int32)[None, :]).astype(jnp.float32)
    pavg = onehot / L                                            # (BL, B) per-sample mean
    sbc = onehot.T                                               # (B, BL) gate broadcast
    lanes = jnp.arange(block_lanes, dtype=jnp.int32)
    cols = jnp.arange(block_lanes // 2, dtype=jnp.int32)
    sel = (lanes[:, None] == 2 * cols[None, :]).astype(jnp.float32)   # (BL, BL/2) pooling

    def full2d(shape):
        return pl.BlockSpec(shape, lambda i: (0, 0))

    grid_spec = pltpu.PrefetchScalarGridSpec(
        num_scalar_prefetch=0,
        grid=(n_blocks,),
        in_specs=[
            pl.BlockSpec((Cin, block_lanes), lambda i: (0, i)),  # packed activations
            full2d((Cout, 3 * Cin)),                             # fused conv1 weights
            full2d((Cout, 3 * Cout)),                            # fused conv2 weights
            full2d((Cout, Cin)),                                 # shortcut 1x1 weight
            full2d((Cout, 4)),                                   # additive terms + fc2 bias
            full2d((hidden, Cout)),                              # SE fc1 weight
            full2d((hidden, 1)),                                 # SE fc1 bias
            full2d((Cout, hidden)),                              # SE fc2 weight
            full2d((block_lanes, samples_per_block)),            # per-sample mean matrix
            full2d((samples_per_block, block_lanes)),            # per-sample broadcast
            full2d((block_lanes, block_lanes // 2)),             # pool even-lane selector
        ],
        out_specs=pl.BlockSpec((Cout, block_lanes // 2), lambda i: (0, i)),
    )

    kernel = functools.partial(residual_se_kernel,
                               seg_len=L, identity_shortcut=identity)

    out_packed = pl.pallas_call(
        kernel,
        out_shape=jax.ShapeDtypeStruct((Cout, Np * Lp), jnp.float32),
        grid_spec=grid_spec,
        compiler_params=pltpu.CompilerParams(
            dimension_semantics=("parallel",),
            vmem_limit_bytes=32 * 1024 * 1024),
    )(x_packed, w1f, w2f, wscf, bias, p["wf1"], bf1, p["wf2"], pavg, sbc, sel)

    # pooled lane-dense output -> (N, Cout, Lp)
    out = out_packed.reshape(Cout, Np, Lp).transpose(1, 0, 2)[:N]
    return out


# ---------------------------------------------------------------------------
# Deterministic parameter init (shapes from ResidualSEBlock.__init__)
# ---------------------------------------------------------------------------
def init_params(key, in_ch, out_ch, k=3, reduction=8):
    hidden = out_ch // reduction
    ks = jax.random.split(key, 20)

    def bn_params(k0, k1, k2, k3, c):
        gamma = 1.0 + 0.1 * jax.random.normal(k0, (c,), jnp.float32)
        beta = 0.1 * jax.random.normal(k1, (c,), jnp.float32)
        mean = 0.1 * jax.random.normal(k2, (c,), jnp.float32)
        var = jax.random.uniform(k3, (c,), jnp.float32, minval=0.5, maxval=1.5)
        return (gamma, beta, mean, var)

    return {
        "w1": 0.3 * jax.random.normal(ks[0], (out_ch, in_ch, k), jnp.float32),
        "b1": 0.1 * jax.random.normal(ks[1], (out_ch,), jnp.float32),
        "bn1": bn_params(ks[2], ks[3], ks[4], ks[5], out_ch),
        "w2": 0.3 * jax.random.normal(ks[6], (out_ch, out_ch, k), jnp.float32),
        "b2": 0.1 * jax.random.normal(ks[7], (out_ch,), jnp.float32),
        "bn2": bn_params(ks[8], ks[9], ks[10], ks[11], out_ch),
        "wsc": 0.3 * jax.random.normal(ks[12], (out_ch, in_ch, 1), jnp.float32),
        "bsc": 0.1 * jax.random.normal(ks[13], (out_ch,), jnp.float32),
        "bnsc": bn_params(ks[14], ks[15], ks[16], ks[17], out_ch),
        "wf1": 0.3 * jax.random.normal(ks[18], (hidden, out_ch), jnp.float32),
        "bf1": jnp.zeros((hidden,), jnp.float32) + 0.05,
        "wf2": 0.3 * jax.random.normal(ks[19], (out_ch, hidden), jnp.float32),
        "bf2": jnp.zeros((out_ch,), jnp.float32) - 0.05,
    }


# ---------------------------------------------------------------------------
# Pure-JAX reference (eval-mode semantics) for correctness check
# ---------------------------------------------------------------------------
def reference_forward(x, p, pool=2, eps=1e-5):
    def bn(u, bnp):
        g, b, m, v = bnp
        return (g[None, :, None] * (u - m[None, :, None])
                / jnp.sqrt(v[None, :, None] + eps) + b[None, :, None])

    def conv1d(u, w, b, pad):
        y = lax.conv_general_dilated(u, w, (1,), ((pad, pad),),
                                     dimension_numbers=("NCH", "OIH", "NCH"))
        return y + b[None, :, None]

    if "wsc" in p:
        res = bn(conv1d(x, p["wsc"], p["bsc"], 0), p["bnsc"])
    else:
        res = x
    h = jax.nn.relu(bn(conv1d(x, p["w1"], p["b1"], 1), p["bn1"]))
    h = jax.nn.relu(bn(conv1d(h, p["w2"], p["b2"], 1), p["bn2"]))
    y = h.mean(-1)                                            # (N, C)
    z = jax.nn.relu(y @ p["wf1"].T + p["bf1"])
    s = jax.nn.sigmoid(z @ p["wf2"].T + p["bf2"])
    h = h * s[:, :, None]
    h = jax.nn.relu(h + res)
    Nn, C, Ll = h.shape
    return h.reshape(Nn, C, Ll // pool, pool).max(-1)


if __name__ == "__main__":
    key = jax.random.PRNGKey(0)
    N, Cin, Cout, L = 16, 4, 16, 16          # packs all 256 lanes into one wide block
    kx, kp = jax.random.split(key)
    x = jax.random.normal(kx, (N, Cin, L), jnp.float32)
    params = init_params(kp, Cin, Cout)

    out = jax.block_until_ready(residual_se_block(x, params))
    ref = reference_forward(x, params)

    assert out.shape == (N, Cout, L // 2), out.shape
    # bf16 matmul operands (f32 accumulation) through two convs -> ~1% tolerance
    np.testing.assert_allclose(np.asarray(out), np.asarray(ref), rtol=3e-2, atol=3e-2)
    print("KERNEL_OK")
</pallas_src>

<mosaic_0001>
module attributes {stable_mosaic.version = 11 : i64} {
  func.func @residual_se_kernel(%arg0: i32, %arg1: memref<4x256xbf16, #tpu.memory_space<vmem>>, %arg2: memref<16x12xbf16, #tpu.memory_space<vmem>>, %arg3: memref<16x48xbf16, #tpu.memory_space<vmem>>, %arg4: memref<16x4xbf16, #tpu.memory_space<vmem>>, %arg5: memref<16x4xf32, #tpu.memory_space<vmem>>, %arg6: memref<2x16xf32, #tpu.memory_space<vmem>>, %arg7: memref<2x1xf32, #tpu.memory_space<vmem>>, %arg8: memref<16x2xf32, #tpu.memory_space<vmem>>, %arg9: memref<256x16xf32, #tpu.memory_space<vmem>>, %arg10: memref<16x256xf32, #tpu.memory_space<vmem>>, %arg11: memref<256x128xf32, #tpu.memory_space<vmem>>, %arg12: memref<16x128xf32, #tpu.memory_space<vmem>>) attributes {dimension_semantics = [#tpu.dimension_semantics<parallel>], iteration_bounds = array<i64: 1>, scalar_prefetch = 0 : i64, scratch_operands = 0 : i64, tpu.core_type = #tpu.core_type<tc>, window_params = [{transform_indices = @transform_0, window_bounds = array<i64: 4, 256>}, {pipeline_mode = #tpu.pipeline_mode<synchronous>, transform_indices = @transform_1, window_bounds = array<i64: 16, 12>}, {pipeline_mode = #tpu.pipeline_mode<synchronous>, transform_indices = @transform_2, window_bounds = array<i64: 16, 48>}, {pipeline_mode = #tpu.pipeline_mode<synchronous>, transform_indices = @transform_3, window_bounds = array<i64: 16, 4>}, {pipeline_mode = #tpu.pipeline_mode<synchronous>, transform_indices = @transform_4, window_bounds = array<i64: 16, 4>}, {pipeline_mode = #tpu.pipeline_mode<synchronous>, transform_indices = @transform_5, window_bounds = array<i64: 2, 16>}, {pipeline_mode = #tpu.pipeline_mode<synchronous>, transform_indices = @transform_6, window_bounds = array<i64: 2, 1>}, {pipeline_mode = #tpu.pipeline_mode<synchronous>, transform_indices = @transform_7, window_bounds = array<i64: 16, 2>}, {pipeline_mode = #tpu.pipeline_mode<synchronous>, transform_indices = @transform_8, window_bounds = array<i64: 256, 16>}, {pipeline_mode = #tpu.pipeline_mode<synchronous>, transform_indices = @transform_9, window_bounds = array<i64: 16, 256>}, {pipeline_mode = #tpu.pipeline_mode<synchronous>, transform_indices = @transform_10, window_bounds = array<i64: 256, 128>}, {transform_indices = @transform_11, window_bounds = array<i64: 16, 128>}]} {
    %c0 = arith.constant 0 : index
    %c0_0 = arith.constant 0 : index
    %0 = vector.load %arg1[%c0, %c0_0] : memref<4x256xbf16, #tpu.memory_space<vmem>>, vector<4x256xbf16>
    %1 = tpu.iota {dimensions = array<i32: 1>} : vector<1x256xi32>
    %c16_i32 = arith.constant 16 : i32
    %c0_i32 = arith.constant 0 : i32
    %2 = arith.cmpi eq, %c16_i32, %c0_i32 : i32
    %c1_i32 = arith.constant 1 : i32
    %3 = arith.select %2, %c1_i32, %c16_i32 : i32
    %4 = vector.broadcast %3 : i32 to vector<1x256xi32>
    %5 = arith.remsi %1, %4 : vector<1x256xi32>
    %c0_i32_1 = arith.constant 0 : i32
    %6 = vector.broadcast %c0_i32_1 : i32 to vector<1x256xi32>
    %7 = arith.cmpi ne, %5, %6 : vector<1x256xi32>
    %c0_i32_2 = arith.constant 0 : i32
    %8 = vector.broadcast %c0_i32_2 : i32 to vector<1x256xi32>
    %9 = arith.cmpi slt, %5, %8 : vector<1x256xi32>
    %c0_i32_3 = arith.constant 0 : i32
    %10 = arith.cmpi slt, %3, %c0_i32_3 : i32
    %11 = vector.broadcast %10 : i1 to vector<1x256xi1>
    %12 = vector.broadcast %11 : vector<1x256xi1> to vector<1x256xi1>
    %13 = arith.xori %9, %12 : vector<1x256xi1>
    %14 = arith.andi %13, %7 : vector<1x256xi1>
    %15 = vector.broadcast %3 : i32 to vector<1x256xi32>
    %16 = arith.addi %5, %15 : vector<1x256xi32>
    %17 = arith.select %14, %16, %5 : vector<1x256xi1>, vector<1x256xi32>
    %c0_i32_4 = arith.constant 0 : i32
    %18 = vector.broadcast %c0_i32_4 : i32 to vector<1x256xi32>
    %19 = arith.cmpi ne, %17, %18 : vector<1x256xi32>
    %c15_i32 = arith.constant 15 : i32
    %20 = vector.broadcast %c15_i32 : i32 to vector<1x256xi32>
    %21 = arith.cmpi ne, %17, %20 : vector<1x256xi32>
    %c0_5 = arith.constant 0 : index
    %c0_6 = arith.constant 0 : index
    %22 = vector.load %arg5[%c0_5, %c0_6] : memref<16x4xf32, #tpu.memory_space<vmem>>, vector<16x4xf32>
    %23 = vector.extract_strided_slice %22 {offsets = [0, 0], sizes = [16, 1], strides = [1, 1]} : vector<16x4xf32> to vector<16x1xf32>
    %24 = vector.extract_strided_slice %22 {offsets = [0, 1], sizes = [16, 1], strides = [1, 1]} : vector<16x4xf32> to vector<16x1xf32>
    %25 = vector.extract_strided_slice %22 {offsets = [0, 2], sizes = [16, 1], strides = [1, 1]} : vector<16x4xf32> to vector<16x1xf32>
    %26 = vector.extract_strided_slice %22 {offsets = [0, 3], sizes = [16, 1], strides = [1, 1]} : vector<16x4xf32> to vector<16x1xf32>
    %c0_7 = arith.constant 0 : index
    %c0_8 = arith.constant 0 : index
    %27 = vector.load %arg4[%c0_7, %c0_8] : memref<16x4xbf16, #tpu.memory_space<vmem>>, vector<16x4xbf16>
    %cst = arith.constant dense<0.000000e+00> : vector<16x256xf32>
    %28 = tpu.matmul %27, %0, %cst {dimension_numbers = #tpu.dot_dimension_numbers<[1], [0], [0], [1], [0, 0, 1, 1], [], []>} : vector<16x4xbf16>, vector<4x256xbf16>, vector<16x256xf32> -> vector<16x256xf32>
    %29 = vector.broadcast %25 : vector<16x1xf32> to vector<16x256xf32>
    %30 = arith.addf %28, %29 : vector<16x256xf32>
    %cst_9 = arith.constant 0.000000e+00 : bf16
    %31 = vector.broadcast %cst_9 : bf16 to vector<4x1xbf16>
    %32 = vector.extract_strided_slice %0 {offsets = [0, 0], sizes = [4, 255], strides = [1, 1]} : vector<4x256xbf16> to vector<4x255xbf16>
    %33 = tpu.concatenate %31, %32 in 1 : vector<4x1xbf16>, vector<4x255xbf16> -> vector<4x256xbf16>
    %c0_i32_10 = arith.constant 0 : i32
    %34 = arith.sitofp %c0_i32_10 : i32 to bf16
    %35 = vector.shape_cast %19 : vector<1x256xi1> to vector<1x256xi1>
    %36 = vector.broadcast %35 : vector<1x256xi1> to vector<4x256xi1>
    %37 = vector.broadcast %34 : bf16 to vector<4x256xbf16>
    %38 = arith.select %36, %33, %37 : vector<4x256xi1>, vector<4x256xbf16>
    %cst_11 = arith.constant 0.000000e+00 : bf16
    %39 = vector.broadcast %cst_11 : bf16 to vector<4x1xbf16>
    %40 = vector.extract_strided_slice %0 {offsets = [0, 1], sizes = [4, 255], strides = [1, 1]} : vector<4x256xbf16> to vector<4x255xbf16>
    %41 = tpu.concatenate %40, %39 in 1 : vector<4x255xbf16>, vector<4x1xbf16> -> vector<4x256xbf16>
    %c0_i32_12 = arith.constant 0 : i32
    %42 = arith.sitofp %c0_i32_12 : i32 to bf16
    %43 = vector.shape_cast %21 : vector<1x256xi1> to vector<1x256xi1>
    %44 = vector.broadcast %43 : vector<1x256xi1> to vector<4x256xi1>
    %45 = vector.broadcast %42 : bf16 to vector<4x256xbf16>
    %46 = arith.select %44, %41, %45 : vector<4x256xi1>, vector<4x256xbf16>
    %47 = tpu.concatenate %38, %0, %46 in 0 : vector<4x256xbf16>, vector<4x256xbf16>, vector<4x256xbf16> -> vector<12x256xbf16>
    %c0_13 = arith.constant 0 : index
    %c0_14 = arith.constant 0 : index
    %48 = vector.load %arg2[%c0_13, %c0_14] : memref<16x12xbf16, #tpu.memory_space<vmem>>, vector<16x12xbf16>
    %cst_15 = arith.constant dense<0.000000e+00> : vector<16x256xf32>
    %49 = tpu.matmul %48, %47, %cst_15 {dimension_numbers = #tpu.dot_dimension_numbers<[1], [0], [0], [1], [0, 0, 1, 1], [], []>} : vector<16x12xbf16>, vector<12x256xbf16>, vector<16x256xf32> -> vector<16x256xf32>
    %50 = vector.broadcast %23 : vector<16x1xf32> to vector<16x256xf32>
    %51 = arith.addf %49, %50 : vector<16x256xf32>
    %cst_16 = arith.constant 0.000000e+00 : f32
    %52 = vector.broadcast %cst_16 : f32 to vector<16x256xf32>
    %53 = arith.maximumf %51, %52 : vector<16x256xf32>
    %54 = arith.truncf %53 : vector<16x256xf32> to vector<16x256xbf16>
    %cst_17 = arith.constant 0.000000e+00 : bf16
    %55 = vector.broadcast %cst_17 : bf16 to vector<16x1xbf16>
    %56 = vector.extract_strided_slice %54 {offsets = [0, 0], sizes = [16, 255], strides = [1, 1]} : vector<16x256xbf16> to vector<16x255xbf16>
    %57 = tpu.concatenate %55, %56 in 1 : vector<16x1xbf16>, vector<16x255xbf16> -> vector<16x256xbf16>
    %c0_i32_18 = arith.constant 0 : i32
    %58 = arith.sitofp %c0_i32_18 : i32 to bf16
    %59 = vector.shape_cast %19 : vector<1x256xi1> to vector<1x256xi1>
    %60 = vector.broadcast %59 : vector<1x256xi1> to vector<16x256xi1>
    %61 = vector.broadcast %58 : bf16 to vector<16x256xbf16>
    %62 = arith.select %60, %57, %61 : vector<16x256xi1>, vector<16x256xbf16>
    %cst_19 = arith.constant 0.000000e+00 : bf16
    %63 = vector.broadcast %cst_19 : bf16 to vector<16x1xbf16>
    %64 = vector.extract_strided_slice %54 {offsets = [0, 1], sizes = [16, 255], strides = [1, 1]} : vector<16x256xbf16> to vector<16x255xbf16>
    %65 = tpu.concatenate %64, %63 in 1 : vector<16x255xbf16>, vector<16x1xbf16> -> vector<16x256xbf16>
    %c0_i32_20 = arith.constant 0 : i32
    %66 = arith.sitofp %c0_i32_20 : i32 to bf16
    %67 = vector.shape_cast %21 : vector<1x256xi1> to vector<1x256xi1>
    %68 = vector.broadcast %67 : vector<1x256xi1> to vector<16x256xi1>
    %69 = vector.broadcast %66 : bf16 to vector<16x256xbf16>
    %70 = arith.select %68, %65, %69 : vector<16x256xi1>, vector<16x256xbf16>
    %71 = tpu.concatenate %62, %54, %70 in 0 : vector<16x256xbf16>, vector<16x256xbf16>, vector<16x256xbf16> -> vector<48x256xbf16>
    %c0_21 = arith.constant 0 : index
    %c0_22 = arith.constant 0 : index
    %72 = vector.load %arg3[%c0_21, %c0_22] : memref<16x48xbf16, #tpu.memory_space<vmem>>, vector<16x48xbf16>
    %cst_23 = arith.constant dense<0.000000e+00> : vector<16x256xf32>
    %73 = tpu.matmul %72, %71, %cst_23 {dimension_numbers = #tpu.dot_dimension_numbers<[1], [0], [0], [1], [0, 0, 1, 1], [], []>} : vector<16x48xbf16>, vector<48x256xbf16>, vector<16x256xf32> -> vector<16x256xf32>
    %74 = vector.broadcast %24 : vector<16x1xf32> to vector<16x256xf32>
    %75 = arith.addf %73, %74 : vector<16x256xf32>
    %cst_24 = arith.constant 0.000000e+00 : f32
    %76 = vector.broadcast %cst_24 : f32 to vector<16x256xf32>
    %77 = arith.maximumf %75, %76 : vector<16x256xf32>
    %c0_25 = arith.constant 0 : index
    %c0_26 = arith.constant 0 : index
    %78 = vector.load %arg9[%c0_25, %c0_26] : memref<256x16xf32, #tpu.memory_space<vmem>>, vector<256x16xf32>
    %cst_27 = arith.constant dense<0.000000e+00> : vector<16x16xf32>
    %79 = tpu.matmul %77, %78, %cst_27 {dimension_numbers = #tpu.dot_dimension_numbers<[1], [0], [0], [1], [0, 0, 1, 1], [], []>} : vector<16x256xf32>, vector<256x16xf32>, vector<16x16xf32> -> vector<16x16xf32>
    %c0_28 = arith.constant 0 : index
    %c0_29 = arith.constant 0 : index
    %80 = vector.load %arg6[%c0_28, %c0_29] : memref<2x16xf32, #tpu.memory_space<vmem>>, vector<2x16xf32>
    %cst_30 = arith.constant dense<0.000000e+00> : vector<2x16xf32>
    %81 = tpu.matmul %80, %79, %cst_30 {dimension_numbers = #tpu.dot_dimension_numbers<[1], [0], [0], [1], [0, 0, 1, 1], [], []>} : vector<2x16xf32>, vector<16x16xf32>, vector<2x16xf32> -> vector<2x16xf32>
    %c0_31 = arith.constant 0 : index
    %c0_32 = arith.constant 0 : index
    %82 = vector.load %arg7[%c0_31, %c0_32] : memref<2x1xf32, #tpu.memory_space<vmem>>, vector<2x1xf32>
    %83 = vector.broadcast %82 : vector<2x1xf32> to vector<2x16xf32>
    %84 = arith.addf %81, %83 : vector<2x16xf32>
    %cst_33 = arith.constant 0.000000e+00 : f32
    %85 = vector.broadcast %cst_33 : f32 to vector<2x16xf32>
    %86 = arith.maximumf %84, %85 : vector<2x16xf32>
    %c0_34 = arith.constant 0 : index
    %c0_35 = arith.constant 0 : index
    %87 = vector.load %arg8[%c0_34, %c0_35] : memref<16x2xf32, #tpu.memory_space<vmem>>, vector<16x2xf32>
    %cst_36 = arith.constant dense<0.000000e+00> : vector<16x16xf32>
    %88 = tpu.matmul %87, %86, %cst_36 {dimension_numbers = #tpu.dot_dimension_numbers<[1], [0], [0], [1], [0, 0, 1, 1], [], []>} : vector<16x2xf32>, vector<2x16xf32>, vector<16x16xf32> -> vector<16x16xf32>
    %89 = vector.broadcast %26 : vector<16x1xf32> to vector<16x16xf32>
    %90 = arith.addf %88, %89 : vector<16x16xf32>
    %91 = arith.negf %90 : vector<16x16xf32>
    %92 = math.exp %91 : vector<16x16xf32>
    %cst_37 = arith.constant 1.000000e+00 : f32
    %93 = vector.broadcast %cst_37 : f32 to vector<16x16xf32>
    %94 = arith.addf %93, %92 : vector<16x16xf32>
    %95 = arith.divf %93, %94 : vector<16x16xf32>
    %c0_38 = arith.constant 0 : index
    %c0_39 = arith.constant 0 : index
    %96 = vector.load %arg10[%c0_38, %c0_39] : memref<16x256xf32, #tpu.memory_space<vmem>>, vector<16x256xf32>
    %cst_40 = arith.constant dense<0.000000e+00> : vector<16x256xf32>
    %97 = tpu.matmul %95, %96, %cst_40 {dimension_numbers = #tpu.dot_dimension_numbers<[1], [0], [0], [1], [0, 0, 1, 1], [], []>} : vector<16x16xf32>, vector<16x256xf32>, vector<16x256xf32> -> vector<16x256xf32>
    %98 = arith.mulf %77, %97 : vector<16x256xf32>
    %99 = arith.addf %98, %30 : vector<16x256xf32>
    %cst_41 = arith.constant 0.000000e+00 : f32
    %100 = vector.broadcast %cst_41 : f32 to vector<16x256xf32>
    %101 = arith.maximumf %99, %100 : vector<16x256xf32>
    %cst_42 = arith.constant 0.000000e+00 : f32
    %102 = vector.broadcast %cst_42 : f32 to vector<16x1xf32>
    %103 = vector.extract_strided_slice %101 {offsets = [0, 1], sizes = [16, 255], strides = [1, 1]} : vector<16x256xf32> to vector<16x255xf32>
    %104 = tpu.concatenate %103, %102 in 1 : vector<16x255xf32>, vector<16x1xf32> -> vector<16x256xf32>
    %105 = arith.maximumf %101, %104 : vector<16x256xf32>
    %c0_43 = arith.constant 0 : index
    %c0_44 = arith.constant 0 : index
    %106 = vector.load %arg11[%c0_43, %c0_44] : memref<256x128xf32, #tpu.memory_space<vmem>>, vector<256x128xf32>
    %cst_45 = arith.constant dense<0.000000e+00> : vector<16x128xf32>
    %107 = tpu.matmul %105, %106, %cst_45 {dimension_numbers = #tpu.dot_dimension_numbers<[1], [0], [0], [1], [0, 0, 1, 1], [], []>} : vector<16x256xf32>, vector<256x128xf32>, vector<16x128xf32> -> vector<16x128xf32>
    %c0_46 = arith.constant 0 : index
    %c0_47 = arith.constant 0 : index
    %108 = vector.load %arg12[%c0_46, %c0_47] : memref<16x128xf32, #tpu.memory_space<vmem>>, vector<16x128xf32>
    tpu.vector_store %arg12[%c0_46, %c0_47], %107 {strides = array<i32>} : memref<16x128xf32, #tpu.memory_space<vmem>>, vector<16x128xf32>,
    return
  }
  func.func @transform_0(%arg0: i32) -> (i32, i32) {
    %c0_i32 = arith.constant 0 : i32
    %c0_i32_0 = arith.constant 0 : i32
    return %c0_i32, %arg0 : i32, i32
  }
  func.func @transform_1(%arg0: i32) -> (i32, i32) {
    %c0_i32 = arith.constant 0 : i32
    %c0_i32_0 = arith.constant 0 : i32
    %c0_i32_1 = arith.constant 0 : i32
    return %c0_i32, %c0_i32_0 : i32, i32
  }
  func.func @transform_2(%arg0: i32) -> (i32, i32) {
    %c0_i32 = arith.constant 0 : i32
    %c0_i32_0 = arith.constant 0 : i32
    %c0_i32_1 = arith.constant 0 : i32
    return %c0_i32, %c0_i32_0 : i32, i32
  }
  func.func @transform_3(%arg0: i32) -> (i32, i32) {
    %c0_i32 = arith.constant 0 : i32
    %c0_i32_0 = arith.constant 0 : i32
    %c0_i32_1 = arith.constant 0 : i32
    return %c0_i32, %c0_i32_0 : i32, i32
  }
  func.func @transform_4(%arg0: i32) -> (i32, i32) {
    %c0_i32 = arith.constant 0 : i32
    %c0_i32_0 = arith.constant 0 : i32
    %c0_i32_1 = arith.constant 0 : i32
    return %c0_i32, %c0_i32_0 : i32, i32
  }
  func.func @transform_5(%arg0: i32) -> (i32, i32) {
    %c0_i32 = arith.constant 0 : i32
    %c0_i32_0 = arith.constant 0 : i32
    %c0_i32_1 = arith.constant 0 : i32
    return %c0_i32, %c0_i32_0 : i32, i32
  }
  func.func @transform_6(%arg0: i32) -> (i32, i32) {
    %c0_i32 = arith.constant 0 : i32
    %c0_i32_0 = arith.constant 0 : i32
    %c0_i32_1 = arith.constant 0 : i32
    return %c0_i32, %c0_i32_0 : i32, i32
  }
  func.func @transform_7(%arg0: i32) -> (i32, i32) {
    %c0_i32 = arith.constant 0 : i32
    %c0_i32_0 = arith.constant 0 : i32
    %c0_i32_1 = arith.constant 0 : i32
    return %c0_i32, %c0_i32_0 : i32, i32
  }
  func.func @transform_8(%arg0: i32) -> (i32, i32) {
    %c0_i32 = arith.constant 0 : i32
    %c0_i32_0 = arith.constant 0 : i32
    %c0_i32_1 = arith.constant 0 : i32
    return %c0_i32, %c0_i32_0 : i32, i32
  }
  func.func @transform_9(%arg0: i32) -> (i32, i32) {
    %c0_i32 = arith.constant 0 : i32
    %c0_i32_0 = arith.constant 0 : i32
    %c0_i32_1 = arith.constant 0 : i32
    return %c0_i32, %c0_i32_0 : i32, i32
  }
  func.func @transform_10(%arg0: i32) -> (i32, i32) {
    %c0_i32 = arith.constant 0 : i32
    %c0_i32_0 = arith.constant 0 : i32
    %c0_i32_1 = arith.constant 0 : i32
    return %c0_i32, %c0_i32_0 : i32, i32
  }
  func.func @transform_11(%arg0: i32) -> (i32, i32) {
    %c0_i32 = arith.constant 0 : i32
    %c0_i32_0 = arith.constant 0 : i32
    return %c0_i32, %arg0 : i32, i32
  }
}

</mosaic_0001>

<bundles_post_ra>
// kernel: tpu_custom_call.1
= control target key start
LH: loop header
LB: loop body
LE: loop exit
PB: predicated region body
PF: predicated region fallthrough
CT: control target
= control target key end

     0   :  { %v43_v0 = vlaneseq  ;;  %v1196_v1 = vmov 1983009808   ;;  %v1197_v6 = vmov 0   ;;  %s1650_s0 = inlined_call_operand.vmem [shape: bf16[4,256], index: 0, kind: input, shape index: {}]   ;;  %s1651_s1 = inlined_call_operand.vmem [shape: bf16[16,12], index: 1, kind: input, shape index: {}]   ;;  %s1652_s2 = inlined_call_operand.vmem [shape: bf16[16,48], index: 2, kind: input, shape index: {}]   ;;  %s1653_s3 = inlined_call_operand.vmem [shape: bf16[16,4], index: 3, kind: input, shape index: {}]   ;;  %s1654_s4 = inlined_call_operand.vmem [shape: f32[16,4], index: 4, kind: input, shape index: {}]   ;;  %s1655_s5 = inlined_call_operand.vmem [shape: f32[2,16], index: 5, kind: input, shape index: {}]   ;;  %s1656_s6 = inlined_call_operand.vmem [shape: f32[2,1], index: 6, kind: input, shape index: {}]   ;;  %s1657_s7 = inlined_call_operand.vmem [shape: f32[16,2], index: 7, kind: input, shape index: {}]   ;;  %s1658_s8 = inlined_call_operand.vmem [shape: f32[256,16], index: 8, kind: input, shape index: {}]   ;;  %s1659_s9 = inlined_call_operand.vmem [shape: f32[16,256], index: 9, kind: input, shape index: {}]   ;;  %s1660_s10 = inlined_call_operand.vmem [shape: f32[256,128], index: 10, kind: input, shape index: {}]   ;;  %s1661_s11 = inlined_call_operand.hbm [shape: f32[16,128], index: 11, kind: output, shape index: {}]  }
   0x1   :  { %v95_v2 = vunpack.c.l.s4 %v1196_v1  ;;  %v42_v3 = vld [vmem:[%s1650_s0] sm:$0xf]  ;;  %295 = vmatprep.mubr.bf16.mxu1 %v1197_v6  ;;  %1142 = vset.pattern.permute.xlu0 %v1197_v6 }
   0x2   :  { %v98_v4 = vshrl.u32 %v43_v0, 7  ;;  %v44_v5 = vand.u32 127, %v43_v0  ;;  %v215_v8 = vcombine.low %v42_v3, %v42_v3  ;;  %1143 = vset.pattern.permute.xlu1 %v1197_v6  ;;  %145 = vmatprep.mubr.bf16.mxu0 %v1197_v6 }
   0x3   :  { %v96_v7 = vunpack.c.0.s8 %v95_v2 }
   0x4   :  { %v45_v9 = vadd.s32 128, %v44_v5  ;;  %v50_v10 = vand.u32 15, %v44_v5 }
   0x5   :  { %v99_v11 = vsub.s32 %v96_v7, %v98_v4 }
   0x6   :  { %16 = vsyncpa [#allocation3], 0  ;;  %v57_v12 = vand.u32 15, %v45_v9  ;;  %vm70_vm0 = vcmp.ne.s32.totalorder %v50_v10, 0  ;;  %v176_v13 = vsub.s32 0, %v98_v4  ;;  %v180_v15 = vsub.s32 4, %v98_v4 }
   0x7   :  { %v1276_v14 = vrot.slane %v42_v3, %v99_v11  ;;  %vm1278_vm1 = vcmp.ne.s32.totalorder %v50_v10, 15  ;;  %v222_v17 = vrot.slane %v215_v8, %v99_v11  ;;  %s1198_s0 = smov 1   ;;  %s1199_s19 = smov 127   ;;  %vm106_vm6 = vcmask 1041408   ;;  %v1306_v25 = vld [vmem:[%s1654_s4] sm:$0xff]  ;;  %v1311_v26 = vld [vmem:[%s1654_s4 + $0x8] sm:$0xff] }
   0x8   :  { %vm71_vm2 = vcmp.ne.s32.totalorder %v57_v12, 0  ;;  %vm73_vm3 = vcmp.ne.s32.totalorder %v57_v12, 15  ;;  %vm160_vm7 = vcmask 7168   ;;  %vm190_vm9 = vcmask 1039360   ;;  %v1161_v47 = vld [vmem:[%s1651_s1] sm:$0xff]   ;;  %v419_v9 = vld [vmem:[%s1658_s8 + $0x88] sm:$0xff] }
   0x9   :  { %156 = vrot.lane.b32.xlu1 %v1276_v14, %s1198_s0  ;;  %186 = vrot.lane.b32.xlu0 %v1276_v14, %s1199_s19  ;;  %v101_v18 = vcombine.high %v1276_v14, %v1276_v14  ;;  %vm172_vm4 = vmpackc.low %vm71_vm2, %vm70_vm0  ;;  %v223_v30 = vcombine.high %v222_v17, %v222_v17  ;;  %vm234_vm13 = vcmask 1043456   ;;  %vm258_vm14 = vcmask 1045504   ;;  %v420_v16 = vld [vmem:[%s1658_s8 + $0x90] sm:$0xff] }
   0xa   :  { %v173_v19 = vsel %vm172_vm4, 65537, %v1197_v6  ;;  %vm201_vm5 = vmpackc.low %vm73_vm3, %vm1278_vm1  ;;  %vm254_vm15 = vcmask 97280   ;;  %v1200_v0 = vmov 1   ;;  %vm351_vm0 = vcmask 392192  }
   0xb   :  { %v1291_v20 = vrot.slane %v173_v19, %v176_v13  ;;  %v1293_v21 = vrot.slane %v173_v19, %v180_v15  ;;  %v202_v22 = vsel %vm201_vm5, 65537, %v1197_v6  ;;  %947 = vmatprep.subr.msk.bf16.mxu0 %vm106_vm6, %v101_v18  ;;  %v1162_v19 = vld [vmem:[%s1652_s2] sm:$0xff]   ;;  %vm102_vm1 = vcmask 31744  }
   0xc   :  { %v1297_v23 = vrot.slane %v202_v22, %v176_v13  ;;  %v1299_v24 = vrot.slane %v202_v22, %v180_v15  ;;  %v402_v13 = vld [vmem:[%s1658_s8] sm:$0xff]  ;;  %v403_v15 = vld [vmem:[%s1658_s8 + $0x8] sm:$0xff]  ;;  %v404_v22 = vld [vmem:[%s1658_s8 + $0x10] sm:$0xff]  ;;  %vm1202_vm2 = vmmov 0   ;;  %vm516_vm3 = vcmask 130048  }
   0xd   :  { %158 = vrot.lane.b32.xlu1 %v101_v18, %s1198_s0  ;;  %188 = vrot.lane.b32.xlu0 %v101_v18, %s1199_s19  ;;  %vm182_vm8 = vcmp.ne.s16.totalorder %v1291_v20, 0  ;;  %vm183_vm10 = vcmp.ne.s16.totalorder %v1293_v21, 0  ;;  %v1060_v20 = vpack.c.bf16 %v403_v15, %v402_v13  ;;  %v108_v13 = vsel %vm106_vm6, %v1276_v14, 0  ;;  %v1163_v15 = vld [vmem:[%s1653_s3] sm:$0xff]  }
   0xe   :  { %vm211_vm11 = vcmp.ne.s16.totalorder %v1297_v23, 0  ;;  %vm212_vm12 = vcmp.ne.s16.totalorder %v1299_v24, 0  ;;  %v405_v24 = vld [vmem:[%s1658_s8 + $0x18] sm:$0xff]  ;;  %v422_v23 = vld [vmem:[%s1658_s8 + $0xa0] sm:$0xff]  ;;  %114 = vmatpush1.bf16.msra.mxu0 %v108_v13  ;;  %v1205_v14 = vmov 2   ;;  %vm601_vm4 = vcmask 15360  }
   0xf   :  { %v824_v13 = vld [vmem:[%s1660_s10 + $0x18] sm:$0xff] }
  0x11   :  { %242 = vperm.xlu0 %1142, %v1306_v25   ;;  %246 = vperm.xlu1 %1143, %v1311_v26  }
  0x12   :  { %948 = vmatmul.mubr.msk.bf16.vlgmr.msra.gmra.mrb[0].mxu0 %vm102_vm1, %v1163_v15  ;;  %v841_v15 = vld [vmem:[%s1660_s10 + $0xa0] sm:$0xff] }
  0x15   :  { %1144 = vset.pattern.permute.xlu1 %v1200_v0  ;;  %1145 = vset.pattern.permute.xlu0 %v1200_v0 }
  0x7b   :  { %v157_v27 = vpop.permute.xlu1 %156  ;;  %v187_v28 = vpop.permute.xlu0 %186 }
  0x7c   :  { %v166_v29 = vsel %vm160_vm7, 0, %v157_v27 }
  0x7d   :  { %v184_v33 = vsel %vm182_vm8, %v166_v29, 0 }
  0x7e   :  { %v230_v43 = vsel %vm106_vm6, %v184_v33, %v222_v17  ;;  %v421_v17 = vld [vmem:[%s1658_s8 + $0x98] sm:$0xff] }
  0x7f   :  { %v159_v31 = vpop.permute.xlu1 %158  ;;  %v189_v32 = vpop.permute.xlu0 %188  ;;  %v1062_v21 = vpack.c.bf16 %v421_v17, %v420_v16  ;;  %v425_v33 = vld [vmem:[%s1658_s8 + $0xb8] sm:$0xff]  ;;  %v1201_v16 = vmov 0.0|0.0   ;;  %v1203_v17 = vmov 0.0  }
  0x80   :  { %v161_v34 = vsel %vm160_vm7, %v157_v27, %v159_v31  ;;  %v191_v35 = vsel %vm190_vm9, %v187_v28, %v189_v32  ;;  %v195_v36 = vsel %vm190_vm9, %v189_v32, 0  ;;  %v423_v27 = vld [vmem:[%s1658_s8 + $0xa8] sm:$0xff]  ;;  %v1064_v28 = vpack.c.bf16 %v405_v24, %v404_v22  ;;  %v424_v32 = vld [vmem:[%s1658_s8 + $0xb0] sm:$0xff]  ;;  %1090 = vmatprep.subr.bf16.mxu0 %v1201_v16  ;;  %1050 = vmatprep.mubr.msk.f32.mxu0 %vm1202_vm2, %v1203_v17 }
  0x81   :  { %v185_v37 = vsel %vm183_vm10, %v161_v34, 0  ;;  %v213_v38 = vsel %vm211_vm11, %v191_v35, 0  ;;  %v214_v39 = vsel %vm212_vm12, %v195_v36, 0  ;;  %v1066_v29 = vpack.c.bf16 %v423_v27, %v422_v23  ;;  %v407_v31 = vld [vmem:[%s1658_s8 + $0x28] sm:$0xff]  ;;  %v408_v36 = vld [vmem:[%s1658_s8 + $0x30] sm:$0xff] }
  0x82   :  { %v226_v40 = vrot.slane %v213_v38, 4  ;;  %v227_v41 = vrot.slane %v214_v39, 4  ;;  %v233_v42 = vsel %vm106_vm6, %v185_v37, %v223_v30  ;;  %v406_v30 = vld [vmem:[%s1658_s8 + $0x20] sm:$0xff]  ;;  %v1070_v35 = vpack.c.bf16 %v425_v33, %v424_v32  ;;  %v409_v37 = vld [vmem:[%s1658_s8 + $0x38] sm:$0xff]  ;;  %v427_v39 = vld [vmem:[%s1658_s8 + $0xc8] sm:$0xff] }
  0x83   :  { %v1068_v34 = vpack.c.bf16 %v407_v31, %v406_v30  ;;  %v426_v38 = vld [vmem:[%s1658_s8 + $0xc0] sm:$0xff]  ;;  %v842_v16 = vld [vmem:[%s1660_s10 + $0xa8] sm:$0xff] }
  0x84   :  { %v238_v44 = vsel %vm234_vm13, %v233_v42, %v227_v41  ;;  %v236_v45 = vsel %vm234_vm13, %v230_v43, %v226_v40  ;;  %v1072_v40 = vpack.c.bf16 %v409_v37, %v408_v36  ;;  %v1074_v41 = vpack.c.bf16 %v427_v39, %v426_v38  ;;  %v410_v42 = vld [vmem:[%s1658_s8 + $0x40] sm:$0xff]  ;;  %v411_v43 = vld [vmem:[%s1658_s8 + $0x48] sm:$0xff] }
  0x85   :  { %950 = vmatprep.subr.msk.bf16.mxu1 %vm258_vm14, %v238_v44  ;;  %v259_v46 = vsel %vm258_vm14, %v236_v45, 0  ;;  %v428_v44 = vld [vmem:[%s1658_s8 + $0xd0] sm:$0xff]  ;;  %v429_v45 = vld [vmem:[%s1658_s8 + $0xd8] sm:$0xff]  ;;  %v591_v32 = vld [vmem:[%s1657_s7] sm:$0xff] }
  0x86   :  { %264 = vmatpush1.bf16.msra.mxu1 %v259_v46  ;;  %v1076_v46 = vpack.c.bf16 %v411_v43, %v410_v42  ;;  %v592_v38 = vld [vmem:[%s1657_s7 + $0x8] sm:$0xff]  ;;  %v700_v43 = vld [vmem:[%s1659_s9 + $0x10] sm:$0xff] }
  0x87   :  { %v699_v39 = vld [vmem:[%s1659_s9 + $0x8] sm:$0xff] }
  0x89   :  { %951 = vmatmul.mubr.msk.bf16.vlgmr.msra.gmra.mrb[0].mxu1 %vm254_vm15, %v1161_v47  ;;  %v1078_v47 = vpack.c.bf16 %v429_v45, %v428_v44 }
  0x8a   :  { %387 = vmatprep.mubr.bf16.mxu1 %v1197_v6 }
  0x90   :  { %v243_v48 = vpop.permute.xlu0 %242  ;;  %v247_v50 = vpop.permute.xlu1 %246 }
  0xe5   :  { %v1492_v30 = vpop.f32.mrb[0].mxu0 }
 0x15c   :  { %v297_v49 = vpop.f32.mrb[0].mxu1 }
 0x15d   :  { %v298_v51 = vadd.f32 %v297_v49, %v243_v48  ;;  %v299_v52 = vpop.f32.mrb[1].mxu1  ;;  %v413_v49 = vld [vmem:[%s1658_s8 + $0x58] sm:$0xff] }
 0x15e   :  { %v300_v53 = vadd.f32 %v299_v52, %v243_v48  ;;  %v301_v54 = vpop.f32.mrb[2].mxu1  ;;  %v412_v48 = vld [vmem:[%s1658_s8 + $0x50] sm:$0xff] }
 0x15f   :  { %v302_v55 = vadd.f32 %v301_v54, %v247_v50  ;;  %v303_v56 = vpop.f32.mrb[3].mxu1  ;;  %v306_v58 = vmax.f32 %v298_v51, 0.0  ;;  %v431_v51 = vld [vmem:[%s1658_s8 + $0xe8] sm:$0xff]  ;;  %v1080_v52 = vpack.c.bf16 %v413_v49, %v412_v48  ;;  %v414_v54 = vld [vmem:[%s1658_s8 + $0x60] sm:$0xff] }
 0x160   :  { %v304_v57 = vadd.f32 %v303_v56, %v247_v50  ;;  %v307_v60 = vmax.f32 %v300_v53, 0.0  ;;  %v430_v50 = vld [vmem:[%s1658_s8 + $0xe0] sm:$0xff] }
 0x161   :  { %v308_v59 = vmax.f32 %v302_v55, 0.0  ;;  %v1082_v53 = vpack.c.bf16 %v431_v51, %v430_v50  ;;  %v415_v55 = vld [vmem:[%s1658_s8 + $0x68] sm:$0xff] }
 0x162   :  { %v309_v61 = vmax.f32 %v304_v57, 0.0  ;;  %v1084_v56 = vpack.c.bf16 %v415_v55, %v414_v54  ;;  %v432_v57 = vld [vmem:[%s1658_s8 + $0xf0] sm:$0xff] }
 0x163   :  { %v310_v62 = vpack.c.bf16 %v308_v59, %v306_v58  ;;  %v433_v58 = vld [vmem:[%s1658_s8 + $0xf8] sm:$0xff] }
 0x164   :  { %v311_v63 = vpack.c.bf16 %v309_v61, %v307_v60  ;;  %v1086_v59 = vpack.c.bf16 %v433_v58, %v432_v57  ;;  %v416_v60 = vld [vmem:[%s1658_s8 + $0x70] sm:$0xff]  ;;  %v417_v61 = vld [vmem:[%s1658_s8 + $0x78] sm:$0xff] }
 0x165   :  { %314 = vrot.lane.b32.xlu1 %v310_v62, %s1198_s0 }
 0x166   :  { %316 = vrot.lane.b32.xlu0 %v311_v63, %s1198_s0 }
 0x169   :  { %325 = vrot.lane.b32.xlu1 %v310_v62, %s1199_s19 }
 0x16a   :  { %327 = vrot.lane.b32.xlu0 %v311_v63, %s1199_s19 }
 0x16d   :  { %339 = vperm.xlu1 %1144, %v1306_v25  }
 0x16e   :  { %343 = vperm.xlu0 %1145, %v1311_v26  }
 0x171   :  { %1146 = vset.pattern.permute.xlu1 %v1197_v6  ;;  %v418_v6 = vld [vmem:[%s1658_s8 + $0x80] sm:$0xff] }
 0x172   :  { %v1058_v12 = vpack.c.bf16 %v419_v9, %v418_v6 }
 0x1d7   :  { %v315_v1 = vpop.permute.xlu1 %314 }
 0x1d8   :  { %v321_v2 = vsel %vm160_vm7, 0, %v315_v1  ;;  %v317_v3 = vpop.permute.xlu0 %316 }
 0x1d9   :  { %v323_v4 = vsel %vm182_vm8, %v321_v2, 0  ;;  %v318_v5 = vsel %vm160_vm7, %v315_v1, %v317_v3 }
 0x1da   :  { %953 = vmatprep.subr.msk.bf16.mxu1 %vm183_vm10, %v318_v5 }
 0x1db   :  { %356 = vmatpush1.bf16.msra.mxu1 %v323_v4  ;;  %v326_v7 = vpop.permute.xlu1 %325 }
 0x1dc   :  { %v328_v8 = vpop.permute.xlu0 %327  ;;  %357 = vmatprep.subr.bf16.mxu1 %v311_v63 }
 0x1dd   :  { %v329_v10 = vsel %vm190_vm9, %v326_v7, %v328_v8  ;;  %v332_v11 = vsel %vm190_vm9, %v328_v8, 0 }
 0x1de   :  { %v334_v18 = vsel %vm211_vm11, %v329_v10, 0 }
 0x1df   :  { %358 = vmatpush1.bf16.msra.mxu1 %v310_v62  ;;  %v1088_v62 = vpack.c.bf16 %v417_v61, %v416_v60  ;;  %v838_v60 = vld [vmem:[%s1660_s10 + $0x88] sm:$0xff]  ;;  %v821_v61 = vld [vmem:[%s1660_s10] sm:$0xff] }
 0x1e0   :  { %954 = vmatprep.subr.msk.bf16.mxu1 %vm212_vm12, %v332_v11 }
 0x1e3   :  { %360 = vmatpush1.bf16.msra.mxu1 %v334_v18  ;;  %v510_v18 = vld [vmem:[%s1656_s6] sm:$0x3] }
 0x1e4   :  { %1059 = vmatprep.subr.bf16.mxu1 %v1058_v12  ;;  %513 = vperm.xlu1 %1146, %v510_v18   ;;  %v1105_v18 = vpack.c.bf16 %v842_v16, %v841_v15 }
 0x1e6   :  { %955 = vmatmul.mubr.msk.bf16.vlgmr.msra.gmra.mrb[4].mxu1 %vm351_vm0, %v1162_v19  ;;  %v1204_v19 = vmov 3  }
 0x1e7   :  { %1061 = vmatpush3.bf16.msra.mxu1 %v1060_v20  ;;  %1148 = vset.pattern.permute.xlu0 %v1204_v19 }
 0x1e8   :  { %1063 = vmatprep.subr.bf16.mxu1 %v1062_v21  ;;  %598 = vperm.xlu0 %1148, %v1311_v26  }
 0x1e9   :  { %1147 = vset.pattern.permute.xlu1 %v1204_v19  ;;  %v825_v19 = vld [vmem:[%s1660_s10 + $0x20] sm:$0xff] }
 0x1ea   :  { %594 = vperm.xlu1 %1147, %v1306_v25  }
 0x1eb   :  { %1065 = vmatpush3.bf16.msra.mxu1 %v1064_v28 }
 0x1ec   :  { %1067 = vmatprep.subr.bf16.mxu1 %v1066_v29  ;;  %v340_v63 = vpop.permute.xlu1 %339  ;;  %v509_v29 = vld [vmem:[%s1655_s5] sm:$0x3] }
 0x1ed   :  { %v344_v3 = vpop.permute.xlu0 %343 }
 0x1ee   :  { %1149 = vset.pattern.permute.xlu1 %v1205_v14  ;;  %v826_v14 = vld [vmem:[%s1660_s10 + $0x28] sm:$0xff] }
 0x1ef   :  { %1069 = vmatpush3.bf16.msra.mxu1 %v1068_v34  ;;  %80 = vperm.xlu1 %1149, %v1306_v25   ;;  %v1494_v25 = vpop.f32.mrb[1].mxu0 }
 0x1f0   :  { %1071 = vmatprep.subr.bf16.mxu1 %v1070_v35 }
 0x1f3   :  { %1073 = vmatpush3.bf16.msra.mxu1 %v1072_v40  ;;  %85 = vperm.xlu1 %1149, %v1311_v26   ;;  %v1496_v26 = vpop.f32.mrb[2].mxu0  ;;  %v701_v40 = vld [vmem:[%s1659_s9 + $0x18] sm:$0xff] }
 0x1f4   :  { %1075 = vmatprep.subr.bf16.mxu1 %v1074_v41  ;;  %v1498_v31 = vpop.f32.mrb[3].mxu0  ;;  %v698_v41 = vld [vmem:[%s1659_s9] sm:$0xff]  ;;  %v1093_v42 = vpack.c.bf16 %v701_v40, %v699_v39  ;;  %v831_v40 = vld [vmem:[%s1660_s10 + $0x50] sm:$0xff] }
 0x1f5   :  { %v1095_v44 = vpack.c.bf16 %v700_v43, %v698_v41  ;;  %v832_v41 = vld [vmem:[%s1660_s10 + $0x58] sm:$0xff]  ;;  %v850_v43 = vld [vmem:[%s1660_s10 + $0xe8] sm:$0xff] }
 0x1f7   :  { %1077 = vmatpush3.bf16.msra.mxu1 %v1076_v46 }
 0x1f8   :  { %1079 = vmatprep.subr.bf16.mxu1 %v1078_v47 }
 0x1fb   :  { %1081 = vmatpush3.bf16.msra.mxu1 %v1080_v52 }
 0x1fc   :  { %1083 = vmatprep.subr.bf16.mxu1 %v1082_v53 }
 0x1ff   :  { %1085 = vmatpush3.bf16.msra.mxu1 %v1084_v56 }
 0x200   :  { %1087 = vmatprep.subr.bf16.mxu1 %v1086_v59  ;;  %v837_v59 = vld [vmem:[%s1660_s10 + $0x80] sm:$0xff] }
 0x203   :  { %1089 = vmatpush3.bf16.msra.mxu1 %v1088_v62  ;;  %v1097_v62 = vpack.c.bf16 %v838_v60, %v837_v59 }
 0x263   :  { %v514_v33 = vpop.permute.xlu1 %513 }
 0x267   :  { %v599_v45 = vpop.permute.xlu0 %598 }
 0x269   :  { %v595_v47 = vpop.permute.xlu1 %594 }
 0x2b9   :  { %v389_v0 = vpop.f32.mrb[4].mxu1 }
 0x2ba   :  { %v1455_v1 = vadd.f32 %v389_v0, %v340_v63  ;;  %v391_v2 = vpop.f32.mrb[5].mxu1  ;;  %v839_v0 = vld [vmem:[%s1660_s10 + $0x90] sm:$0xff] }
 0x2bb   :  { %v1457_v4 = vadd.f32 %v391_v2, %v340_v63  ;;  %v393_v5 = vpop.f32.mrb[6].mxu1  ;;  %v822_v63 = vld [vmem:[%s1660_s10 + $0x8] sm:$0xff]  ;;  %v840_v2 = vld [vmem:[%s1660_s10 + $0x98] sm:$0xff] }
 0x2bc   :  { %v395_v7 = vpop.f32.mrb[7].mxu1  ;;  %v398_v9 = vmax.f32 %v1455_v1, 0.0  ;;  %v1463_v10 = vadd.f32 %v393_v5, %v344_v3  ;;  %v1101_v5 = vpack.c.bf16 %v840_v2, %v839_v0 }
 0x2bd   :  { %v399_v8 = vmax.f32 %v1457_v4, 0.0  ;;  %v1460_v6 = vadd.f32 %v395_v7, %v344_v3  ;;  %v1099_v3 = vpack.c.bf16 %v822_v63, %v821_v61  ;;  %v823_v7 = vld [vmem:[%s1660_s10 + $0x10] sm:$0xff] }
 0x2be   :  { %v400_v12 = vmax.f32 %v1463_v10, 0.0 }
 0x2bf   :  { %v401_v11 = vmax.f32 %v1460_v6, 0.0  ;;  %498 = vmatprep.mubr.f32.mxu1 %v399_v8 }
 0x2c0   :  { %499 = vmatmul.mubr.f32.vlgmr.msra.gmra.mrb[8].mxu1 %v398_v9 }
 0x2c1   :  { %503 = vmatprep.mubr.f32.mxu1 %v401_v11 }
 0x2c4   :  { %504 = vmatmul.mubr.f32.gmra.mrb[10].mxu1 %v400_v12 }
 0x393   :  { %v996_v20 = vpop.f32.mrb[8].mxu1 }
 0x394   :  { %v997_v21 = vpop.f32.mrb[9].mxu1 }
 0x395   :  { %v998_v22 = vadd.f32 %v997_v21, %v996_v20  ;;  %v843_v20 = vld [vmem:[%s1660_s10 + $0xb0] sm:$0xff]  ;;  %v844_v21 = vld [vmem:[%s1660_s10 + $0xb8] sm:$0xff] }
 0x397   :  { %v999_v24 = vpop.f32.mrb[10].mxu1 }
 0x398   :  { %v1000_v23 = vpop.f32.mrb[11].mxu1 }
 0x399   :  { %v1001_v27 = vadd.f32 %v1000_v23, %v999_v24  ;;  %v1109_v24 = vpack.c.bf16 %v844_v21, %v843_v20  ;;  %v827_v23 = vld [vmem:[%s1660_s10 + $0x30] sm:$0xff] }
 0x39b   :  { %v1091_v28 = vpack.c.bf16 %v1001_v27, %v998_v22  ;;  %v1107_v22 = vpack.c.bf16 %v826_v14, %v825_v19  ;;  %v828_v27 = vld [vmem:[%s1660_s10 + $0x38] sm:$0xff] }
 0x39d   :  { %1092 = vmatpush3.bf16.msra.mxu0 %v1091_v28  ;;  %v845_v28 = vld [vmem:[%s1660_s10 + $0xc0] sm:$0xff] }
 0x3a0   :  { %1051 = vmatmul.mubr.msk.f32.vlgmr.msra.gmra.mrb[4].mxu0 %vm516_vm3, %v509_v29  ;;  %v846_v29 = vld [vmem:[%s1660_s10 + $0xc8] sm:$0xff] }
 0x3a1   :  { %1055 = vmatprep.mubr.msk.f32.mxu0 %vm601_vm4, %v591_v32  ;;  %v1111_v32 = vpack.c.bf16 %v828_v27, %v827_v23 }
 0x473   :  { %v586_v34 = vpop.f32.mrb[4].mxu0 }
 0x474   :  { %v587_v35 = vadd.f32 %v586_v34, %v514_v33  ;;  %v1052_v36 = vpop.f32.mrb[5].mxu0  ;;  %v1113_v33 = vpack.c.bf16 %v846_v29, %v845_v28  ;;  %v829_v34 = vld [vmem:[%s1660_s10 + $0x40] sm:$0xff] }
 0x475   :  { %v847_v36 = vld [vmem:[%s1660_s10 + $0xd0] sm:$0xff] }
 0x476   :  { %v590_v37 = vmax.f32 %v587_v35, 0.0  ;;  %v830_v35 = vld [vmem:[%s1660_s10 + $0x48] sm:$0xff] }
 0x478   :  { %1053 = vmatprep.subr.msk.mxu0 %vm106_vm6, %v590_v37 }
 0x479   :  { %1054 = vmatpush3.msk.msra.mxu0 %vm106_vm6, %v590_v37  ;;  %v848_v37 = vld [vmem:[%s1660_s10 + $0xd8] sm:$0xff] }
 0x47a   :  { %1056 = vmatmul.mubr.msk.f32.vlgmr.msra.gmra.mrb[6].mxu0 %vm601_vm4, %v592_v38  ;;  %1094 = vmatprep.subr.bf16.mxu0 %v1093_v42  ;;  %v1115_v38 = vpack.c.bf16 %v830_v35, %v829_v34  ;;  %v1117_v39 = vpack.c.bf16 %v848_v37, %v847_v36  ;;  %v849_v42 = vld [vmem:[%s1660_s10 + $0xe0] sm:$0xff] }
 0x47b   :  { %772 = vmatprep.mubr.f32.mxu0 %v1203_v17  ;;  %1096 = vmatpush1.bf16.msra.mxu0 %v1095_v44  ;;  %v1119_v44 = vpack.c.bf16 %v832_v41, %v831_v40 }
 0x47c   :  { %1098 = vmatprep.subr.bf16.mxu0 %v1097_v62 }
 0x54d   :  { %v1057_v46 = vpop.f32.mrb[6].mxu0 }
 0x54e   :  { %v677_v48 = vpop.f32.mrb[7].mxu0  ;;  %v683_v49 = vadd.f32 %v1057_v46, %v599_v45  ;;  %v1121_v45 = vpack.c.bf16 %v850_v43, %v849_v42  ;;  %v833_v46 = vld [vmem:[%s1660_s10 + $0x60] sm:$0xff] }
 0x54f   :  { %v678_v50 = vadd.f32 %v677_v48, %v595_v47  ;;  %v834_v47 = vld [vmem:[%s1660_s10 + $0x68] sm:$0xff] }
 0x550   :  { %v961_v51 = vmul.f32 -1.442695, %v683_v49  ;;  %v1123_v48 = vpack.c.bf16 %v834_v47, %v833_v46  ;;  %v81_v49 = vpop.permute.xlu1 %80 }
 0x551   :  { %v960_v52 = vmul.f32 -1.442695, %v678_v50  ;;  %v851_v50 = vld [vmem:[%s1660_s10 + $0xf0] sm:$0xff]  ;;  %v150_v60 = vadd.f32 %v1494_v25, %v81_v49 }
 0x552   :  { %1164 = vpow2.f32 %v961_v51  ;;  %v852_v51 = vld [vmem:[%s1660_s10 + $0xf8] sm:$0xff] }
 0x553   :  { %1166 = vpow2.f32 %v960_v52  ;;  %v1125_v52 = vpack.c.bf16 %v852_v51, %v851_v50 }
 0x554   :  { %v86_v61 = vpop.permute.xlu1 %85 }
 0x555   :  { %v154_v1 = vadd.f32 %v1498_v31, %v86_v61 }
 0x55c   :  { %v1165_v53 = vpop.eup %1164 }
 0x55d   :  { %v1167_v54 = vpop.eup %1166  ;;  %v693_v56 = vadd.f32 1.0, %v1165_v53  ;;  %v835_v53 = vld [vmem:[%s1660_s10 + $0x70] sm:$0xff] }
 0x55e   :  { %v692_v55 = vadd.f32 1.0, %v1167_v54  ;;  %v836_v54 = vld [vmem:[%s1660_s10 + $0x78] sm:$0xff]  ;;  %s1206_s10 = smov [#allocation2]  }
 0x560   :  { %1168 = vrcp.f32 %v692_v55  ;;  %v1127_v55 = vpack.c.bf16 %v836_v54, %v835_v53 }
 0x561   :  { %1170 = vrcp.f32 %v693_v56 }
 0x56a   :  { %v1169_v57 = vpop.eup %1168 }
 0x56b   :  { %962 = vmatmul.mubr.msk.f32.vlgmr.msra.gmra.mrb[8].mxu0 %vm516_vm3, %v1169_v57  ;;  %v1171_v58 = vpop.eup %1170  ;;  %v148_v57 = vadd.f32 %v1492_v30, %v81_v49 }
 0x56c   :  { %778 = vmatprep.mubr.f32.mxu0 %v1203_v17  ;;  %1100 = vmatpush3.bf16.msra.mxu0 %v1099_v3  ;;  %v1103_v17 = vpack.c.bf16 %v824_v13, %v823_v7  ;;  %v152_v3 = vadd.f32 %v1496_v26, %v86_v61 }
 0x56d   :  { %1102 = vmatprep.subr.bf16.mxu0 %v1101_v5 }
 0x56f   :  { %963 = vmatmul.mubr.msk.f32.gmra.mrb[10].mxu0 %vm516_vm3, %v1171_v58 }
 0x570   :  { %1104 = vmatpush3.bf16.msra.mxu0 %v1103_v17 }
 0x571   :  { %1106 = vmatprep.subr.bf16.mxu0 %v1105_v18 }
 0x574   :  { %1108 = vmatpush3.bf16.msra.mxu0 %v1107_v22 }
 0x575   :  { %1110 = vmatprep.subr.bf16.mxu0 %v1109_v24 }
 0x578   :  { %1112 = vmatpush3.bf16.msra.mxu0 %v1111_v32 }
 0x579   :  { %1114 = vmatprep.subr.bf16.mxu0 %v1113_v33 }
 0x57c   :  { %1116 = vmatpush3.bf16.msra.mxu0 %v1115_v38 }
 0x57d   :  { %1118 = vmatprep.subr.bf16.mxu0 %v1117_v39 }
 0x580   :  { %1120 = vmatpush3.bf16.msra.mxu0 %v1119_v44 }
 0x581   :  { %1122 = vmatprep.subr.bf16.mxu0 %v1121_v45 }
 0x584   :  { %1124 = vmatpush3.bf16.msra.mxu0 %v1123_v48 }
 0x585   :  { %1126 = vmatprep.subr.bf16.mxu0 %v1125_v52 }
 0x588   :  { %1128 = vmatpush3.bf16.msra.mxu0 %v1127_v55 }
 0x63e   :  { %v774_v56 = vpop.f32.mrb[8].mxu0 }
 0x63f   :  { %v785_v58 = vmul.f32 %v774_v56, %v398_v9  ;;  %v776_v59 = vpop.f32.mrb[9].mxu0 }
 0x640   :  { %v786_v62 = vmul.f32 %v776_v59, %v399_v8 }
 0x641   :  { %v789_v63 = vadd.f32 %v785_v58, %v148_v57 }
 0x642   :  { %v790_v0 = vadd.f32 %v786_v62, %v150_v60  ;;  %v780_v2 = vpop.f32.mrb[10].mxu0 }
 0x643   :  { %v793_v5 = vmax.f32 %v789_v63, 0.0  ;;  %v787_v7 = vmul.f32 %v780_v2, %v400_v12  ;;  %v782_v30 = vpop.f32.mrb[11].mxu0 }
 0x644   :  { %v794_v9 = vmax.f32 %v790_v0, 0.0  ;;  %v788_v25 = vmul.f32 %v782_v30, %v401_v11 }
 0x645   :  { %v791_v13 = vadd.f32 %v787_v7, %v152_v3 }
 0x646   :  { %v792_v15 = vadd.f32 %v788_v25, %v154_v1  ;;  %v1150_v4 = vpack.i.bf16 %v793_v5, %v794_v9 }
 0x647   :  { %v795_v8 = vmax.f32 %v791_v13, 0.0 }
 0x648   :  { %v796_v16 = vmax.f32 %v792_v15, 0.0  ;;  %1151 = vrot.lane.b32.xlu0 %v1150_v4, %s1199_s19 }
 0x64a   :  { %v1155_v17 = vpack.i.bf16 %v795_v8, %v796_v16 }
 0x64c   :  { %1156 = vrot.lane.b32.xlu1 %v1155_v17, %s1199_s19  ;;  %s935_s19 = sshll.u32 %s1206_s10, 4  ;;  %s936_s19 = int_to_ptr.vmem [resolvable:$true] %s935_s19 }
 0x64d   :  { %s1172_s24 = scalar_lea.vmem %s936_s19, 256  ;;  %p1177_p1 = scmp.lt.s32.totalorder %s936_s19, %s936_s19 }
 0x64e   :  { %p1173_p0 = scmp.ne.s32.totalorder %s936_s19, %s1172_s24  ;;  %p1178_p2 = scmp.lt.s32.totalorder %s1172_s24, %s1172_s24 }
 0x650   :  { %p1179_p3 = por %p1178_p2, %p1177_p1 }
 0x652   :  { %p1180_p4 = pnand %p1179_p3, %p1173_p0 }
 0x6ba   :  { %v1152_v26 = vpop.permute.xlu0 %1151 }
 0x6bb   :  { %v1154_v10 = vunpack.i.h.bf16 %v1152_v26  ;;  %v1153_v12 = vunpack.i.l.bf16 %v1152_v26 }
 0x6bd   :  { %v809_v18 = vsel %vm190_vm9, %v1154_v10, %v1153_v12  ;;  %v815_v31 = vsel %vm190_vm9, %v1153_v12, 0.0 }
 0x6be   :  { %v817_v19 = vmax.f32 %v793_v5, %v809_v18  ;;  %v818_v6 = vmax.f32 %v794_v9, %v815_v31  ;;  %v1157_v11 = vpop.permute.xlu1 %1156 }
 0x6bf   :  { %v1159_v14 = vunpack.i.h.bf16 %v1157_v11  ;;  %v1158_v20 = vunpack.i.l.bf16 %v1157_v11 }
 0x6c0   :  { %917 = vmatprep.mubr.f32.mxu0 %v818_v6 }
 0x6c1   :  { %v816_v21 = vsel %vm190_vm9, %v1158_v20, 0.0  ;;  %918 = vmatmul.mubr.f32.vlgmr.msra.gmra.mrb[12].mxu0 %v817_v19  ;;  %v810_v22 = vsel %vm190_vm9, %v1159_v14, %v1158_v20 }
 0x6c2   :  { %v820_v24 = vmax.f32 %v796_v16, %v816_v21  ;;  %v819_v23 = vmax.f32 %v795_v8, %v810_v22 }
 0x6c4   :  { %922 = vmatprep.mubr.f32.mxu0 %v820_v24 }
 0x6c5   :  { %923 = vmatmul.mubr.f32.gmra.mrb[14].mxu0 %v819_v23 }
 0x794   :  { %v1040_v27 = vpop.f32.mrb[12].mxu0 }
 0x795   :  { %v1041_v28 = vpop.f32.mrb[13].mxu0 }
 0x796   :  { %v1042_v29 = vadd.f32 %v1041_v28, %v1040_v27 }
 0x798   :  { %928 = vst [vmem:[#allocation2] sm:$0xff] %v1042_v29  ;;  %v1043_v32 = vpop.f32.mrb[14].mxu0 }
 0x799   :  { %v1044_v33 = vpop.f32.mrb[15].mxu0 }
 0x79a   :  { %v1045_v34 = vadd.f32 %v1044_v33, %v1043_v32 }
 0x79c   :  { %929 = vst [vmem:[#allocation2 + $0x8] sm:$0xff] %v1045_v34 }
 0x79d   :  { %1183 = shalt.err (!%p1180_p4)
}
 0x79e   :  { %s1184_s2 = scalar_lea.hbm %s1661_s11, 256 }
 0x79f   :  { %p1185_p5 = scmp.ne.s32.totalorder %s1661_s11, %s1184_s2  ;;  %p1188_p6 = scmp.lt.u32.totalorder %s1184_s2, %s1661_s11 }
 0x7a1   :  { %p1190_p7 = pnand %p1188_p6, %p1185_p5 }
 0x7a3   :  { %1193 = shalt.err (!%p1190_p7)
}
 0x7a4   :  { %s1207_s27 = smov 128   ;;  %s1208_s28 = smov 8  }
 0x7a5   :  { %941 = dma.vmem_to_hbm [thread:$0]  %s936_s19, 256, %s1661_s11, [#allocation3], %s1207_s27, %s1207_s27, %s1208_s28  }
 0x7a6   :  { %1194 = dma.done.wait [#allocation3], 256  }
 0x7a7   :  { %1195 = vsyncadd [#allocation3], 4294967040 }
 0x7a8   :  { %945 = vsyncpa [#allocation3], 1 }

</bundles_post_ra>
